<compile_context>
chip_gen: v5e
topology: v5e:2x2
jax: 0.10.0
libtpu: 0.0.40
codegen_flags: <defaults>
</compile_context>

<pallas_src>
import math

import jax
import jax.numpy as jnp
from jax.experimental import pallas as pl
from jax.experimental.pallas import tpu as pltpu


_LANE = 128
_C_MAX = 512 * _LANE           # cap flattened row width at 64K elements
_PAD_WIDTH = 8 * _LANE         # lane-dense width for the padded fallback path
_TARGET_BLOCK_BYTES = 2 << 20  # ~2 MiB tiles: copy roofline saturates by here
_MIN_GRID_STEPS = 16           # keep DMA pipeline warm / feed both v7x TCs


# ----------------------------------------------------------------------------
# Kernel: identity copy of one (row_tile, C) block (pure HBM<->VMEM traffic).
# ----------------------------------------------------------------------------
def _copy_kernel(x_ref, o_ref):
    o_ref[...] = x_ref[...]


def _vmem_capacity_bytes() -> int:
    """Generation-aware VMEM capacity (falls back to the smallest, v7x)."""
    try:
        return int(pltpu.get_tpu_info().vmem_capacity_bytes)
    except Exception:
        return 64 << 20  # conservative: v7x per-TC VMEM


def _lane_dense_width(total: int) -> int:
    """Largest C <= _C_MAX with C % 128 == 0 and total % C == 0.

    Only called when total % 128 == 0, so the result is always lane-dense.
    """
    m = total // _LANE
    for cand in range(min(m, _C_MAX // _LANE), 0, -1):
        if m % cand == 0:
            return cand * _LANE
    return _LANE


def _pallas_copy_2d(x2d: jnp.ndarray) -> jnp.ndarray:
    """Materialize a lane-dense (R, C) array through a Pallas copy kernel."""
    R, C = x2d.shape
    itemsize = jnp.dtype(x2d.dtype).itemsize
    # dtype-aware sublane pack: 8 rows for 32-bit, 16 for bf16, 32 for int8/fp8
    sub = max(8, 32 // itemsize)

    if R <= sub:
        # Full extent on the row axis (legal for any R == full array dim).
        row_tile = R
    else:
        # Small (~2 MiB) tiles: measured copy roofline saturates well before
        # this, and small tiles keep the 4x (in/out double-buffer) VMEM cost
        # tiny on v7x (64 MiB) and v5e's default scoped budget.
        rows_by_vmem = (_TARGET_BLOCK_BYTES // (C * itemsize)) // sub * sub
        # Guarantee many grid steps for large R so prefetch/writeback overlap
        # within each core (and both v7x TCs get several steps each).
        rows_by_steps = (R // _MIN_GRID_STEPS) // sub * sub
        row_tile = max(sub, min(max(rows_by_vmem, sub),
                                max(rows_by_steps, sub),
                                (R // sub) * sub))

    grid = (pl.cdiv(R, row_tile),)
    block_bytes = row_tile * C * itemsize
    # 2 input bufs + 2 output bufs (double buffering) + modest headroom for
    # Mosaic internal scratch.  No 32 MiB floor.
    vmem_limit = int(min(_vmem_capacity_bytes() * 3 // 4,
                         4 * block_bytes + (8 << 20)))

    def build(dim_sems):
        return pl.pallas_call(
            _copy_kernel,
            out_shape=jax.ShapeDtypeStruct((R, C), x2d.dtype),
            grid_spec=pltpu.PrefetchScalarGridSpec(
                num_scalar_prefetch=0,
                grid=grid,
                in_specs=[pl.BlockSpec((row_tile, C), lambda i: (i, 0))],
                out_specs=pl.BlockSpec((row_tile, C), lambda i: (i, 0)),
            ),
            compiler_params=pltpu.CompilerParams(
                dimension_semantics=dim_sems,
                vmem_limit_bytes=vmem_limit,
            ),
            cost_estimate=pl.CostEstimate(
                flops=0,
                transcendentals=0,
                bytes_accessed=2 * R * C * itemsize,
            ),
        )

    # Prefer CORE_PARALLEL on the row axis (v7x: both TensorCores split the
    # rows); fall back to plain "parallel" if this build/chip rejects it.
    options = []
    core_par = getattr(pltpu, "CORE_PARALLEL", None)
    if core_par is not None and grid[0] >= 2:
        options.append((core_par,))
    options.append(("parallel",))

    err = None
    for dim_sems in options:
        try:
            return build(dim_sems)(x2d)
        except Exception as e:  # lowering/compile rejection -> safe fallback
            err = e
    raise err


def _materialized_copy(x: jnp.ndarray, out_shape) -> jnp.ndarray:
    """Route all bytes through the Pallas copy (opt-in materialization)."""
    total = x.size
    flat = jnp.reshape(x, (-1,))  # metadata only (row-major, == .view order)

    if total % _LANE == 0:
        C = _lane_dense_width(total)
        y2d = _pallas_copy_2d(jnp.reshape(flat, (total // C, C)))
        return jnp.reshape(y2d, out_shape)

    # Poorly-factorable totals: pad to a lane-dense width, copy, slice back.
    # Never collapses to <128-wide blocks (the masked vst.msk cliff).
    C = _PAD_WIDTH
    padded = pl.cdiv(total, C) * C
    flat_p = jnp.pad(flat, (0, padded - total))
    y2d = _pallas_copy_2d(jnp.reshape(flat_p, (padded // C, C)))
    return jnp.reshape(jnp.reshape(y2d, (-1,))[:total], out_shape)


class View:
    """JAX/Pallas equivalent of the PyTorch View module (pure reshape).

    Default: metadata-only jnp.reshape (the faithful, zero-cost translation
    of torch.Tensor.view).  Pass materialize=True to explicitly force the
    bytes through the Pallas HBM->VMEM->HBM copy kernel.
    """
    # TODO(synk): torch .view()'s contiguity requirement has no JAX
    # equivalent; inputs torch would reject are silently accepted here.

    def __init__(self, *shape, materialize: bool = False):
        self.shape = shape
        self.materialize = materialize

    def __call__(self, x: jnp.ndarray) -> jnp.ndarray:
        total = x.size
        out_shape = list(self.shape)

        # Resolve a single -1 exactly like torch.view / jnp.reshape.
        neg = [i for i, d in enumerate(out_shape) if d == -1]
        if len(neg) > 1:
            raise ValueError("View: at most one -1 dimension is allowed")
        if neg:
            known = math.prod(d for d in out_shape if d != -1)
            if known == 0 or total % known != 0:
                raise ValueError(
                    f"View: cannot reshape {x.shape} -> {tuple(self.shape)}")
            out_shape[neg[0]] = total // known
        out_shape = tuple(out_shape)
        if math.prod(out_shape) != total:
            raise ValueError(
                f"View: cannot reshape {x.shape} -> {tuple(self.shape)}")

        if not self.materialize or total == 0:
            # Common case: reshape is metadata-only.  No kernel, no traffic.
            return jnp.reshape(x, out_shape)
        return _materialized_copy(x, out_shape)


if __name__ == "__main__":
    key = jax.random.PRNGKey(0)

    # Case 1: default View (metadata-only path), as the encoder uses it:
    # View(-1, C*H*W) on an NCHW activation.
    B, C, H, W = 2, 4, 16, 16
    x = jax.random.normal(key, (B, C, H, W), dtype=jnp.float32)
    ref = jnp.reshape(x, (-1, C * H * W))
    y = jax.block_until_ready(View(-1, C * H * W)(x))
    assert y.shape == (B, C * H * W), y.shape
    assert y.dtype == x.dtype
    assert bool(jnp.all(y == ref))

    # Case 2: opt-in materializing copy through the Pallas kernel
    # (total divisible by 128 -> lane-dense factorization path).
    ym = jax.block_until_ready(View(-1, C * H * W, materialize=True)(x))
    assert ym.shape == (B, C * H * W), ym.shape
    assert ym.dtype == x.dtype
    assert bool(jnp.all(ym == ref))

    # Case 3: materializing copy where total (2*1*28*28 = 1568) is NOT a
    # multiple of 128 -> exercises the pad-to-lane-dense fallback path
    # (MNIST-like 1x28x28 input).
    x2 = jax.random.normal(key, (2, 1, 28, 28), dtype=jnp.float32)
    ref2 = jnp.reshape(x2, (2, -1))
    y2 = jax.block_until_ready(View(2, -1, materialize=True)(x2))
    assert y2.shape == (2, 28 * 28), y2.shape
    assert y2.dtype == x2.dtype
    assert bool(jnp.all(y2 == ref2))

    print("KERNEL_OK")
</pallas_src>

<mosaic_0001>
module attributes {stable_mosaic.version = 11 : i64} {
  func.func @_copy_kernel(%arg0: i32, %arg1: memref<1x2048xf32, #tpu.memory_space<vmem>>, %arg2: memref<1x2048xf32, #tpu.memory_space<vmem>>) attributes {dimension_semantics = [#tpu.dimension_semantics<parallel>], iteration_bounds = array<i64: 1>, scalar_prefetch = 0 : i64, scratch_operands = 0 : i64, tpu.core_type = #tpu.core_type<tc>, window_params = [{transform_indices = @transform_0, window_bounds = array<i64: 1, 2048>}, {transform_indices = @transform_1, window_bounds = array<i64: 1, 2048>}]} {
    %c0 = arith.constant 0 : index
    %c0_0 = arith.constant 0 : index
    %0 = vector.load %arg1[%c0, %c0_0] : memref<1x2048xf32, #tpu.memory_space<vmem>>, vector<1x2048xf32>
    %c0_1 = arith.constant 0 : index
    %c0_2 = arith.constant 0 : index
    %1 = vector.load %arg2[%c0_1, %c0_2] : memref<1x2048xf32, #tpu.memory_space<vmem>>, vector<1x2048xf32>
    tpu.vector_store %arg2[%c0_1, %c0_2], %0 {strides = array<i32>} : memref<1x2048xf32, #tpu.memory_space<vmem>>, vector<1x2048xf32>,
    return
  }
  func.func @transform_0(%arg0: i32) -> (i32, i32) {
    %c0_i32 = arith.constant 0 : i32
    %c0_i32_0 = arith.constant 0 : i32
    return %arg0, %c0_i32 : i32, i32
  }
  func.func @transform_1(%arg0: i32) -> (i32, i32) {
    %c0_i32 = arith.constant 0 : i32
    %c0_i32_0 = arith.constant 0 : i32
    return %arg0, %c0_i32 : i32, i32
  }
}

</mosaic_0001>

<bundles_post_ra>
// kernel: tpu_custom_call.1
= control target key start
LH: loop header
LB: loop body
LE: loop exit
PB: predicated region body
PF: predicated region fallthrough
CT: control target
= control target key end

     0   :  { %6 = vsyncpa [#allocation3], 0  ;;  %s116_s0 = inlined_call_operand.hbm [shape: f32[1,2048], index: 0, kind: input, shape index: {}]   ;;  %s117_s1 = inlined_call_operand.hbm [shape: f32[1,2048], index: 1, kind: output, shape index: {}]  }
   0x1   :  { %7 = vsyncpa [#allocation4], 0  ;;  %s13_s8 = sshll.u32 %s116_s0, 4  ;;  %s98_s9 = smov [#allocation2]   ;;  %s14_s8 = int_to_ptr.hbm [resolvable:$true] %s13_s8 }
   0x2   :  { %s15_s10 = sshll.u32 %s98_s9, 4  ;;  %s16_s10 = int_to_ptr.vmem [resolvable:$true] %s15_s10 }
   0x3   :  { %18 = dma.hbm_to_vmem [thread:$0]  %s14_s8, 256, %s16_s10, [#allocation3]  }
   0x4   :  { %94 = dma.done.wait [#allocation3], 256  }
   0x5   :  { %95 = vsyncadd [#allocation3], 4294967040  ;;  %s99_s11 = smov [#allocation5]   ;;  %s34_s15 = sshll.u32 %s117_s1, 4  ;;  %v23_v0 = vld [vmem:[#allocation2] sm:$0xff]  ;;  %v24_v1 = vld [vmem:[#allocation2 + $0x8] sm:$0xff]  ;;  %s35_s15 = int_to_ptr.hbm [resolvable:$true] %s34_s15 }
   0x6   :  { %s32_s12 = sshll.u32 %s99_s11, 4  ;;  %25 = vst [vmem:[#allocation5] sm:$0xff] %v23_v0  ;;  %s33_s12 = int_to_ptr.vmem [resolvable:$true] %s32_s12 }
   0x7   :  { %26 = vst [vmem:[#allocation5 + $0x8] sm:$0xff] %v24_v1 }
   0x8   :  { %37 = dma.vmem_to_hbm [thread:$0]  %s33_s12, 256, %s35_s15, [#allocation4]  }
   0x9   :  { %96 = dma.done.wait [#allocation4], 256  }
   0xa   :  { %97 = vsyncadd [#allocation4], 4294967040 }
   0xb   :  { %42 = vsyncpa [#allocation3], 1 }
   0xc   :  { %43 = vsyncpa [#allocation4], 1 }

</bundles_post_ra>
